<compile_context>
chip_gen: v5e
topology: v5e:2x2
jax: 0.10.0
libtpu: 0.0.40
codegen_flags: <defaults>
</compile_context>

<pallas_src>
import functools

import jax
import jax.numpy as jnp
from jax import lax
from jax.experimental import pallas as pl
from jax.experimental.pallas import tpu as pltpu


def _projection_head_kernel(x_ref, w1_ref, w2_ref, params_ref, o_ref, *,
                            eps, approximate_gelu):
    # x:      (TB, E)
    # w1:     (E, P)
    # w2:     (P, P)
    # params: (8, P)  rows 0..3 = [b1, b2, gamma, beta], rows 4..7 = padding
    b1 = params_ref[0:1, :].astype(jnp.float32)
    b2 = params_ref[1:2, :].astype(jnp.float32)
    gamma = params_ref[2:3, :].astype(jnp.float32)
    beta = params_ref[3:4, :].astype(jnp.float32)

    # projection = x @ W1 + b1 (MXU in input dtype, f32 accumulation)
    projected = jnp.dot(x_ref[...], w1_ref[...],
                        preferred_element_type=jnp.float32) + b1

    if approximate_gelu:
        # tanh approximation: uses the EUP slot, frees VALU bundles.
        c = 0.7978845608028654  # sqrt(2/pi)
        h = 0.5 * projected * (
            1.0 + jnp.tanh(c * (projected + 0.044715 * projected * projected * projected)))
    else:
        # exact GELU (erf form) to match PyTorch nn.GELU() default semantics
        h = 0.5 * projected * (1.0 + lax.erf(projected * 0.7071067811865476))

    # fc = gelu(projected) @ W2 + b2
    h = jnp.dot(h.astype(w2_ref.dtype), w2_ref[...],
                preferred_element_type=jnp.float32) + b2

    # Dropout is identity in eval mode.
    # TODO(synk): training-mode dropout (pltpu.prng_seed / prng_random_bits) not implemented.

    # residual (f32)
    h = h + projected

    # LayerNorm over the last dim; two-pass variance (mean subtracted first)
    # to avoid E[x^2]-E[x]^2 cancellation.
    p = h.shape[-1]
    mean = jnp.sum(h, axis=-1, keepdims=True) * (1.0 / p)
    d = h - mean
    var = jnp.sum(d * d, axis=-1, keepdims=True) * (1.0 / p)
    out = d * lax.rsqrt(var + eps) * gamma + beta

    o_ref[...] = out.astype(o_ref.dtype)


def _round_up(n, m):
    return ((n + m - 1) // m) * m


def projection_head(x, w1, b1, w2, b2, gamma, beta, *, eps=1e-5,
                    block_b=4096, approximate_gelu=False):
    """Fused ProjectionHead forward.

    x: (B, E) -> (B, P).  Weights stored [in, out] (transposed vs PyTorch
    nn.Linear.weight); biases / gamma / beta of shape (P,) or (1, P).
    Feed bf16 x/w1/w2 on v6e/v7x for full MXU rate; accumulation and all
    elementwise math stay f32.
    """
    B, E = x.shape
    P = w1.shape[1]

    # Pack the four per-feature vectors into one sublane-aligned (8, P) block.
    vecs = jnp.stack(
        [b1.reshape(P), b2.reshape(P), gamma.reshape(P), beta.reshape(P)],
        axis=0,
    ).astype(jnp.float32)
    params = jnp.concatenate([vecs, jnp.zeros((4, P), jnp.float32)], axis=0)

    # Batch tile: dtype-native sublane multiple (8 f32 / 16 bf16 / 32 int8).
    x_item = jnp.dtype(x.dtype).itemsize
    sub = {4: 8, 2: 16, 1: 32}.get(x_item, 8)
    padded_b = _round_up(B, sub)
    blk = max(sub, (block_b // sub) * sub)

    if padded_b <= blk:
        if padded_b >= 2 * sub:
            # Split into (at least) two tiles so both v7x TensorCores get work.
            tb = _round_up(pl.cdiv(padded_b, 2), sub)
        else:
            tb = padded_b
    else:
        tb = blk
    n_tiles = pl.cdiv(B, tb)

    # VMEM budget: double-buffered x/out tiles + resident weights/params
    # + ~3 live (tb, P) f32 intermediates; capped below v7x's 64 MiB physical.
    w1_item = jnp.dtype(w1.dtype).itemsize
    w2_item = jnp.dtype(w2.dtype).itemsize
    out_item = x_item
    x_tile_bytes = tb * E * x_item
    o_tile_bytes = tb * P * out_item
    weight_bytes = E * P * w1_item + P * P * w2_item + 8 * P * 4
    interm_bytes = 3 * tb * P * 4
    footprint = 2 * (x_tile_bytes + o_tile_bytes) + 2 * weight_bytes + interm_bytes
    vmem_limit = int(min(max(footprint + (4 << 20), 16 << 20), 48 << 20))

    cost = pl.CostEstimate(
        flops=2 * B * (E * P + P * P),
        transcendentals=B * P,
        bytes_accessed=(B * E * x_item + B * P * out_item
                        + E * P * w1_item + P * P * w2_item + 8 * P * 4),
    )

    kernel = functools.partial(_projection_head_kernel, eps=eps,
                               approximate_gelu=approximate_gelu)
    out = pl.pallas_call(
        kernel,
        out_shape=jax.ShapeDtypeStruct((B, P), x.dtype),
        grid=(n_tiles,),
        in_specs=[
            pl.BlockSpec((tb, E), lambda i: (i, 0)),   # x: tiled over batch
            pl.BlockSpec((E, P), lambda i: (0, 0)),    # w1: resident
            pl.BlockSpec((P, P), lambda i: (0, 0)),    # w2: resident
            pl.BlockSpec((8, P), lambda i: (0, 0)),    # b1/b2/gamma/beta: resident
        ],
        out_specs=pl.BlockSpec((tb, P), lambda i: (i, 0)),
        compiler_params=pltpu.CompilerParams(
            dimension_semantics=("parallel",),
            vmem_limit_bytes=vmem_limit,
        ),
        cost_estimate=cost,
    )(x, w1, w2, params)

    return out


def projection_head_ref(x, w1, b1, w2, b2, gamma, beta, eps=1e-5):
    projected = x @ w1 + b1.reshape(1, -1)
    h = 0.5 * projected * (1.0 + lax.erf(projected / jnp.sqrt(2.0)))
    h = h @ w2 + b2.reshape(1, -1)
    h = h + projected
    mean = jnp.mean(h, -1, keepdims=True)
    var = jnp.mean((h - mean) ** 2, -1, keepdims=True)
    return (h - mean) / jnp.sqrt(var + eps) * gamma.reshape(1, -1) + beta.reshape(1, -1)


if __name__ == "__main__":
    # Small shapes consistent with the module: embedding_dim=32, projection_dim=128.
    # B=10 is intentionally not a multiple of 8 so it exercises both the
    # two-tile split (grid=2 for v7x) and the ragged last block.
    B, E, P = 10, 32, 128
    key = jax.random.PRNGKey(0)
    kx, k1, k2, k3, k4 = jax.random.split(key, 5)

    x = jax.random.normal(kx, (B, E), jnp.float32)
    # nn.Linear(embedding_dim, projection_dim): weight (P, E) stored transposed (E, P)
    w1 = jax.random.normal(k1, (E, P), jnp.float32) * 0.05
    b1 = jax.random.normal(k2, (P,), jnp.float32) * 0.05
    # nn.Linear(projection_dim, projection_dim)
    w2 = jax.random.normal(k3, (P, P), jnp.float32) * 0.05
    b2 = jax.random.normal(k4, (P,), jnp.float32) * 0.05
    # nn.LayerNorm(projection_dim): default gamma=1, beta=0
    gamma = jnp.ones((P,), jnp.float32)
    beta = jnp.zeros((P,), jnp.float32)

    out = projection_head(x, w1, b1, w2, b2, gamma, beta)
    jax.block_until_ready(out)

    ref = projection_head_ref(x, w1, b1, w2, b2, gamma, beta)
    assert out.shape == (B, P)
    assert jnp.allclose(out, ref, atol=1e-4, rtol=1e-4)
    print("KERNEL_OK")
</pallas_src>

<mosaic_0001>
module attributes {stable_mosaic.version = 11 : i64} {
  func.func @_projection_head_kernel(%arg0: i32, %arg1: memref<8x32xf32, #tpu.memory_space<vmem>>, %arg2: memref<32x128xf32, #tpu.memory_space<vmem>>, %arg3: memref<128x128xf32, #tpu.memory_space<vmem>>, %arg4: memref<8x128xf32, #tpu.memory_space<vmem>>, %arg5: memref<8x128xf32, #tpu.memory_space<vmem>>) attributes {dimension_semantics = [#tpu.dimension_semantics<parallel>], iteration_bounds = array<i64: 2>, scalar_prefetch = 0 : i64, scratch_operands = 0 : i64, tpu.core_type = #tpu.core_type<tc>, window_params = [{transform_indices = @transform_0, window_bounds = array<i64: 8, 32>}, {pipeline_mode = #tpu.pipeline_mode<synchronous>, transform_indices = @transform_1, window_bounds = array<i64: 32, 128>}, {pipeline_mode = #tpu.pipeline_mode<synchronous>, transform_indices = @transform_2, window_bounds = array<i64: 128, 128>}, {pipeline_mode = #tpu.pipeline_mode<synchronous>, transform_indices = @transform_3, window_bounds = array<i64: 8, 128>}, {transform_indices = @transform_4, window_bounds = array<i64: 8, 128>}]} {
    %c0 = arith.constant 0 : index
    %c0_0 = arith.constant 0 : index
    %0 = vector.load %arg4[%c0, %c0_0] : memref<8x128xf32, #tpu.memory_space<vmem>>, vector<1x128xf32>
    %c1 = arith.constant 1 : index
    %c0_1 = arith.constant 0 : index
    %1 = vector.load %arg4[%c1, %c0_1] : memref<8x128xf32, #tpu.memory_space<vmem>>, vector<1x128xf32>
    %c2 = arith.constant 2 : index
    %c0_2 = arith.constant 0 : index
    %2 = vector.load %arg4[%c2, %c0_2] : memref<8x128xf32, #tpu.memory_space<vmem>>, vector<1x128xf32>
    %c3 = arith.constant 3 : index
    %c0_3 = arith.constant 0 : index
    %3 = vector.load %arg4[%c3, %c0_3] : memref<8x128xf32, #tpu.memory_space<vmem>>, vector<1x128xf32>
    %c0_4 = arith.constant 0 : index
    %c0_5 = arith.constant 0 : index
    %4 = vector.load %arg1[%c0_4, %c0_5] : memref<8x32xf32, #tpu.memory_space<vmem>>, vector<8x32xf32>
    %c0_6 = arith.constant 0 : index
    %c0_7 = arith.constant 0 : index
    %5 = vector.load %arg2[%c0_6, %c0_7] : memref<32x128xf32, #tpu.memory_space<vmem>>, vector<32x128xf32>
    %cst = arith.constant dense<0.000000e+00> : vector<8x128xf32>
    %6 = tpu.matmul %4, %5, %cst {dimension_numbers = #tpu.dot_dimension_numbers<[1], [0], [0], [1], [0, 0, 1, 1], [], []>} : vector<8x32xf32>, vector<32x128xf32>, vector<8x128xf32> -> vector<8x128xf32>
    %7 = vector.broadcast %0 : vector<1x128xf32> to vector<8x128xf32>
    %8 = arith.addf %6, %7 : vector<8x128xf32>
    %cst_8 = arith.constant 5.000000e-01 : f32
    %9 = vector.broadcast %cst_8 : f32 to vector<8x128xf32>
    %10 = arith.mulf %9, %8 : vector<8x128xf32>
    %cst_9 = arith.constant 0.707106769 : f32
    %11 = vector.broadcast %cst_9 : f32 to vector<8x128xf32>
    %12 = arith.mulf %8, %11 : vector<8x128xf32>
    %13 = math.erf %12 : vector<8x128xf32>
    %cst_10 = arith.constant 1.000000e+00 : f32
    %14 = vector.broadcast %cst_10 : f32 to vector<8x128xf32>
    %15 = arith.addf %14, %13 : vector<8x128xf32>
    %16 = arith.mulf %10, %15 : vector<8x128xf32>
    %c0_11 = arith.constant 0 : index
    %c0_12 = arith.constant 0 : index
    %17 = vector.load %arg3[%c0_11, %c0_12] : memref<128x128xf32, #tpu.memory_space<vmem>>, vector<128x128xf32>
    %cst_13 = arith.constant dense<0.000000e+00> : vector<8x128xf32>
    %18 = tpu.matmul %16, %17, %cst_13 {dimension_numbers = #tpu.dot_dimension_numbers<[1], [0], [0], [1], [0, 0, 1, 1], [], []>} : vector<8x128xf32>, vector<128x128xf32>, vector<8x128xf32> -> vector<8x128xf32>
    %19 = vector.broadcast %1 : vector<1x128xf32> to vector<8x128xf32>
    %20 = arith.addf %18, %19 : vector<8x128xf32>
    %21 = arith.addf %20, %8 : vector<8x128xf32>
    %cst_14 = arith.constant dense<0.000000e+00> : vector<8xf32>
    %22 = vector.multi_reduction <add>, %21, %cst_14 [1] : vector<8x128xf32> to vector<8xf32>
    %23 = vector.shape_cast %22 : vector<8xf32> to vector<8x1xf32>
    %cst_15 = arith.constant 7.812500e-03 : f32
    %24 = vector.broadcast %cst_15 : f32 to vector<8x1xf32>
    %25 = arith.mulf %23, %24 : vector<8x1xf32>
    %26 = vector.broadcast %25 : vector<8x1xf32> to vector<8x128xf32>
    %27 = arith.subf %21, %26 : vector<8x128xf32>
    %28 = arith.mulf %27, %27 : vector<8x128xf32>
    %cst_16 = arith.constant dense<0.000000e+00> : vector<8xf32>
    %29 = vector.multi_reduction <add>, %28, %cst_16 [1] : vector<8x128xf32> to vector<8xf32>
    %30 = vector.shape_cast %29 : vector<8xf32> to vector<8x1xf32>
    %cst_17 = arith.constant 7.812500e-03 : f32
    %31 = vector.broadcast %cst_17 : f32 to vector<8x1xf32>
    %32 = arith.mulf %30, %31 : vector<8x1xf32>
    %cst_18 = arith.constant 9.99999974E-6 : f32
    %33 = vector.broadcast %cst_18 : f32 to vector<8x1xf32>
    %34 = arith.addf %32, %33 : vector<8x1xf32>
    %35 = math.rsqrt %34 : vector<8x1xf32>
    %36 = vector.broadcast %35 : vector<8x1xf32> to vector<8x128xf32>
    %37 = arith.mulf %27, %36 : vector<8x128xf32>
    %38 = vector.broadcast %2 : vector<1x128xf32> to vector<8x128xf32>
    %39 = arith.mulf %37, %38 : vector<8x128xf32>
    %40 = vector.broadcast %3 : vector<1x128xf32> to vector<8x128xf32>
    %41 = arith.addf %39, %40 : vector<8x128xf32>
    %c0_19 = arith.constant 0 : index
    %c0_20 = arith.constant 0 : index
    %42 = vector.load %arg5[%c0_19, %c0_20] : memref<8x128xf32, #tpu.memory_space<vmem>>, vector<8x128xf32>
    tpu.vector_store %arg5[%c0_19, %c0_20], %41 {strides = array<i32>} : memref<8x128xf32, #tpu.memory_space<vmem>>, vector<8x128xf32>,
    return
  }
  func.func @transform_0(%arg0: i32) -> (i32, i32) {
    %c0_i32 = arith.constant 0 : i32
    %c0_i32_0 = arith.constant 0 : i32
    return %arg0, %c0_i32 : i32, i32
  }
  func.func @transform_1(%arg0: i32) -> (i32, i32) {
    %c0_i32 = arith.constant 0 : i32
    %c0_i32_0 = arith.constant 0 : i32
    %c0_i32_1 = arith.constant 0 : i32
    return %c0_i32, %c0_i32_0 : i32, i32
  }
  func.func @transform_2(%arg0: i32) -> (i32, i32) {
    %c0_i32 = arith.constant 0 : i32
    %c0_i32_0 = arith.constant 0 : i32
    %c0_i32_1 = arith.constant 0 : i32
    return %c0_i32, %c0_i32_0 : i32, i32
  }
  func.func @transform_3(%arg0: i32) -> (i32, i32) {
    %c0_i32 = arith.constant 0 : i32
    %c0_i32_0 = arith.constant 0 : i32
    %c0_i32_1 = arith.constant 0 : i32
    return %c0_i32, %c0_i32_0 : i32, i32
  }
  func.func @transform_4(%arg0: i32) -> (i32, i32) {
    %c0_i32 = arith.constant 0 : i32
    %c0_i32_0 = arith.constant 0 : i32
    return %arg0, %c0_i32 : i32, i32
  }
}

</mosaic_0001>

<bundles_post_ra>
// kernel: tpu_custom_call.1
= control target key start
LH: loop header
LB: loop body
LE: loop exit
PB: predicated region body
PF: predicated region fallthrough
CT: control target
= control target key end

     0   :  { %9 = vsyncpa [#allocation3], 0  ;;  %s1012_s0 = inlined_call_operand.hbm [shape: f32[10,32], index: 0, kind: input, shape index: {}]   ;;  %s1013_s1 = inlined_call_operand.hbm [shape: f32[32,128], index: 1, kind: input, shape index: {}]   ;;  %s1014_s2 = inlined_call_operand.hbm [shape: f32[128,128], index: 2, kind: input, shape index: {}]   ;;  %s1015_s3 = inlined_call_operand.hbm [shape: f32[8,128], index: 3, kind: input, shape index: {}]   ;;  %s1016_s4 = inlined_call_operand.hbm [shape: f32[10,128], index: 4, kind: output, shape index: {}]  }
   0x1   :  { %11 = vsyncpa [#allocation3 + $0x1], 0 }
   0x2   :  { %12 = vsyncpa [#allocation6], 0 }
   0x3   :  { %13 = vsyncpa [#allocation9], 0 }
   0x4   :  { %14 = vsyncpa [#allocation4], 0 }
   0x5   :  { %16 = vsyncpa [#allocation4 + $0x1], 0  ;;  %s852_s15 = smov 0   ;;  %s854_s16 = smov 0  }
   0x6   :  { %s856_s17 = smov 0   ;;  %s858_s18 = smov 0  }
   0x7 LB: > { %s153_s21 = sshll.u32 %s1013_s1, 4  ;;  %s876_s22 = sadd.s32 4294967295, %s820_s18   ;;  %s820_s18 = sphi %s858_s18, %s1027_s18   ;;  %s816_s17 = sphi %s856_s17, %s1026_s17   ;;  %s812_s16 = sphi %s854_s16, %s1025_s16   ;;  %s808_s15 = sphi %s852_s15, %s1024_s15   ;;  %s154_s21 = int_to_ptr.hbm [resolvable:$true] %s153_s21 }
   0x8   : > { %p520_p0 = scmp.ge.s32.totalorder %s820_s18, 1  ;;  %p43_p1 = scmp.eq.s32.totalorder %s876_s22, 0 }
   0x9   : > { %p142_p2 = scmp.lt.s32.totalorder %s820_s18, 3  ;;  %s822_s24 = smov [#allocation5]  }
   0xa   : > { %s155_s25 = sshll.u32 %s822_s24, 4  ;;  %s167_s28 = sshll.u32 %s1014_s2, 4  ;;  %s156_s25 = int_to_ptr.vmem [resolvable:$true] %s155_s25  ;;  %s168_s28 = int_to_ptr.hbm [resolvable:$true] %s167_s28 }
   0xb   : > { %p881_p3 = pnand %p520_p0, %p142_p2  ;;  %s182_s6 = sshll.u32 %s1015_s3, 4  ;;  %s183_s6 = int_to_ptr.hbm [resolvable:$true] %s182_s6 }
   0xc   : > { %s823_s7 = smov [#allocation7]   ;;  %s824_s9 = smov 128  }
   0xd   : > { %p555_p4 = pneg %p881_p3  ;;  %s169_s8 = sshll.u32 %s823_s7, 4  ;;  %s170_s8 = int_to_ptr.vmem [resolvable:$true] %s169_s8 }
   0xe   : > { %s825_s10 = smov 8   ;;  %s826_s11 = smov [#allocation8]  }
   0xf   : > { %p893_p6 = pnand %p555_p4, %p43_p1  ;;  %s184_s12 = sshll.u32 %s826_s11, 4  ;;  %s185_s12 = int_to_ptr.vmem [resolvable:$true] %s184_s12 }
  0x10   : > { %s519_s13 = sadd.s32 4294967294, %s820_s18   ;;  %s908_s14 = sadd.s32 1, %s820_s18  }
  0x11   : > { %558 = dma.hbm_to_vmem [thread:$0]  (!%p893_p6), %s154_s21, 512, %s156_s25, [#allocation6], %s824_s9, %s824_s9, %s825_s10  }
  0x12   : > { %561 = dma.hbm_to_vmem [thread:$0]  (!%p893_p6), %s168_s28, 2048, %s170_s8, [#allocation6], %s824_s9, %s824_s9, %s825_s10  }
  0x13   : > { %564 = dma.hbm_to_vmem [thread:$0]  (!%p893_p6), %s183_s6, 128, %s185_s12, [#allocation9]  }
  0x14   : > { %s29_s19 = sadd.s32 1, %s816_s17  ;;  %s26_s20 = ssub.s32 %s820_s18, %s908_s14 }
  0x15   : > { %p36_p7 = scmp.ne.s32.totalorder %s816_s17, %s812_s16  ;;  %p27_p8 = scmp.eq.s32.totalorder %s26_s20, 0 }
  0x16   : > { %p37_p9 = scmp.eq.s32.totalorder %s820_s18, 0  ;;  %p42_p10 = scmp.ne.s32.totalorder %s812_s16, %s808_s15 }
  0x17   : > { %p129_p11 = scmp.eq.s32.totalorder %s876_s22, 1  ;;  %p135_p0 = scmp.eq.s32.totalorder %s519_s13, 1 }
  0x18   : > { %s920_s21 = scalar_select %p27_p8, %s816_s17, %s29_s19  }
  0x19   : > { %p924_p12 = por %p43_p1, %p42_p10  ;;  %p928_p13 = por %p129_p11, %p36_p7 }
  0x1a   : > { %p38_p2 = por %p37_p9, %p36_p7  ;;  %s195_s26 = sand.u32 1, %s816_s17  }
  0x1b   : > { %p933_p4 = por %p135_p0, %p42_p10  ;;  %p576_p6 = scmp.lt.s32.totalorder %s820_s18, 2 }
  0x1c   : > { %s525_s28 = sshll.u32 %s195_s26, 3  ;;  %s526_s29 = sshll.u32 %s820_s18, 3 }
  0x1d   : > { %s203_s6 = scalar_lea.hbm %s1012_s0, %s526_s29  ;;  %s199_s8 = scalar_lea.vmem [#allocation2], %s525_s28 }
  0x1e   : > { %s205_s7 = sshll.u32 %s203_s6, 4  ;;  %s207_s9 = sshll.u32 %s199_s8, 4  ;;  %s206_s7 = int_to_ptr.hbm [resolvable:$true] %s205_s7  ;;  %s208_s9 = int_to_ptr.vmem [resolvable:$true] %s207_s9 }
  0x1f   : > { %p942_p8 = pnand %p576_p6, %p38_p2  ;;  %s196_s11 = scalar_lea.sflag [#allocation3], %s195_s26 }
  0x20   : > { %s716_s12 = sshra.s32 %s206_s7, 4  ;;  %s723_s28 = scalar_lea.hbm %s1012_s0, 16  ;;  %s717_s12 = int_to_ptr.hbm [resolvable:$true] %s716_s12 }
  0x21   : > { %s718_s13 = scalar_lea.hbm %s717_s12, 8  ;;  %p720_p9 = pneg %p942_p8 }
  0x22   : > { %p719_p7 = scmp.ne.s32.totalorder %s717_s12, %s718_s13  ;;  %p724_p0 = scmp.lt.s32.totalorder %s717_s12, %s1012_s0 }
  0x23   : > { %p725_p2 = scmp.lt.s32.totalorder %s723_s28, %s718_s13 }
  0x24   : > { %p721_p10 = pnand %p720_p9, %p719_p7 }
  0x25   : > { %p726_p6 = por %p725_p2, %p724_p0 }
  0x26   : > { %p722_p11 = pneg %p721_p10 }
  0x28   : > { %p727_p5 = pnand %p726_p6, %p722_p11 }
  0x2a   : > { %730 = shalt.err (!%p727_p5)
}
  0x2b   : > { %568 = dma.hbm_to_vmem [thread:$0]  (!%p942_p8), %s206_s7, 128, %s208_s9, %s196_s11  }
  0x2c   : > { %216 = sbr.rel (%p881_p3) target bundleno = 640 (0x280), region = 36  ;;  %s959_s26 = sand.u32 (!%p881_p3), 1, %s812_s16  }
  0x2d   : > { %s528_s5 = sshll.u32 (!%p881_p3), %s959_s26, 3  ;;  %s219_s6 = scalar_lea.sflag (!%p881_p3), [#allocation3], %s959_s26 }
  0x2e   : > { %s222_s8 = scalar_lea.vmem (!%p881_p3), [#allocation2], %s528_s5 }
  0x31   : > { %791 = dma.done.wait (%p924_p12), %s219_s6, 128  }
  0x32   : > { %793 = vsyncadd (%p924_p12), %s219_s6, 4294967168 }
  0x33   : > { %795 = dma.done.wait (%p43_p1), [#allocation6], 2560  }
  0x34   : > { %797 = vsyncadd (%p43_p1), [#allocation6], 4294964736 }
  0x35   : > { %799 = dma.done.wait (%p43_p1), [#allocation9], 128  }
  0x36   : > { %801 = vsyncadd (%p43_p1), [#allocation9], 4294967168  ;;  %v271_v0 = vld [vmem:[#allocation5 + $0x18] sm:$0xff]  ;;  %v270_v1 = vld [vmem:[#allocation5 + $0x10] sm:$0xff]  ;;  %vm273_vm0 = vcmask 261120   ;;  %s536_s23 = sshll.u32 %s876_s22, 3 }
  0x37   : > { %289 = vmatpush.msra.mxu0 %v271_v0  ;;  %v269_v2 = vld [vmem:[#allocation5 + $0x8] sm:$0xff]  ;;  %v268_v3 = vld [vmem:[#allocation5] sm:$0xff]  ;;  %v267_v4 = vld [vmem:[%s222_s8] sm:$0xff]  ;;  %s415_s9 = scalar_lea.hbm %s1016_s4, %s536_s23  ;;  %s262_s10 = scalar_lea.vmem [#allocation10], %s528_s5 }
  0x38   : > { %v356_v5 = vld [vmem:[#allocation7 + $0x78] sm:$0xff]  ;;  %v355_v6 = vld [vmem:[#allocation7 + $0x70] sm:$0xff]  ;;  %v354_v7 = vld [vmem:[#allocation7 + $0x68] sm:$0xff]  ;;  %s417_s11 = sshll.u32 %s262_s10, 4  ;;  %s419_s12 = sshll.u32 %s415_s9, 4  ;;  %s418_s11 = int_to_ptr.vmem [resolvable:$true] %s417_s11  ;;  %s420_s12 = int_to_ptr.hbm [resolvable:$true] %s419_s12 }
  0x39   : > { %290 = vmatpush.msra.mxu0 %v270_v1  ;;  %358 = vmatpush.msra.mxu1 %v356_v5  ;;  %v353_v8 = vld [vmem:[#allocation7 + $0x60] sm:$0xff]  ;;  %v352_v9 = vld [vmem:[#allocation7 + $0x58] sm:$0xff]  ;;  %v351_v10 = vld [vmem:[#allocation7 + $0x50] sm:$0xff]  ;;  %s405_s22 = scalar_lea.sflag [#allocation4], %s959_s26  ;;  %s760_s13 = sshra.s32 %s420_s12, 4  ;;  %s761_s13 = int_to_ptr.hbm [resolvable:$true] %s760_s13 }
  0x3a   : > { %v350_v11 = vld [vmem:[#allocation7 + $0x48] sm:$0xff]  ;;  %v349_v12 = vld [vmem:[#allocation7 + $0x40] sm:$0xff]  ;;  %v348_v13 = vld [vmem:[#allocation7 + $0x38] sm:$0xff]  ;;  %s762_s19 = scalar_lea.hbm %s761_s13, 8  ;;  %s766_s29 = scalar_lea.hbm %s1016_s4, 16 }
  0x3b   : > { %291 = vmatpush.msra.mxu0 %v269_v2  ;;  %359 = vmatpush.msra.mxu1 %v355_v6  ;;  %v347_v14 = vld [vmem:[#allocation7 + $0x30] sm:$0xff]  ;;  %v346_v15 = vld [vmem:[#allocation7 + $0x28] sm:$0xff]  ;;  %v345_v16 = vld [vmem:[#allocation7 + $0x20] sm:$0xff]  ;;  %p763_p1 = scmp.ne.s32.totalorder %s761_s13, %s762_s19  ;;  %p767_p12 = scmp.lt.s32.totalorder %s761_s13, %s1016_s4 }
  0x3c   : > { %v618_v17 = vld [vmem:[#allocation8] ss:$0 sm:$0xff]  ;;  %v344_v18 = vld [vmem:[#allocation7 + $0x18] sm:$0xff]  ;;  %v343_v19 = vld [vmem:[#allocation7 + $0x10] sm:$0xff]  ;;  %p768_p8 = scmp.lt.s32.totalorder %s766_s29, %s762_s19 }
  0x3d   : > { %292 = vmatpush.msra.mxu0 %v268_v3  ;;  %360 = vmatpush.msra.mxu1 %v354_v7  ;;  %v342_v22 = vld [vmem:[#allocation7 + $0x8] sm:$0xff]  ;;  %v341_v24 = vld [vmem:[#allocation7] sm:$0xff]  ;;  %p764_p3 = pnand %p763_p1, %p928_p13 }
  0x3e   : > { %533 = vmatmul.msk.f32.vlgmr.msra.gmra.mxu0 %vm273_vm0, %v267_v4  ;;  %v619_v63 = vld [vmem:[#allocation8 + $0x1] ss:$0 sm:$0xff]  ;;  %p769_p7 = por %p768_p8, %p767_p12 }
  0x3f   : > { %361 = vmatpush.msra.mxu1 %v353_v8  ;;  %p765_p5 = pneg %p764_p3 }
  0x41   : > { %362 = vmatpush.msra.mxu1 %v352_v9  ;;  %p770_p9 = pnand %p769_p7, %p765_p5 }
  0x43   : > { %363 = vmatpush.msra.mxu1 %v351_v10 }
  0x45   : > { %364 = vmatpush.msra.mxu1 %v350_v11 }
  0x47   : > { %365 = vmatpush.msra.mxu1 %v349_v12 }
  0x49   : > { %366 = vmatpush.msra.mxu1 %v348_v13 }
  0x4b   : > { %367 = vmatpush.msra.mxu1 %v347_v14 }
  0x4d   : > { %368 = vmatpush.msra.mxu1 %v346_v15 }
  0x4f   : > { %369 = vmatpush.msra.mxu1 %v345_v16  ;;  %v620_v16 = vld [vmem:[#allocation8 + $0x2] ss:$0 sm:$0xff] }
  0x51   : > { %370 = vmatpush.msra.mxu1 %v344_v18 }
  0x53   : > { %371 = vmatpush.msra.mxu1 %v343_v19  ;;  %v621_v19 = vld [vmem:[#allocation8 + $0x3] ss:$0 sm:$0xff] }
  0x55   : > { %372 = vmatpush.msra.mxu1 %v342_v22 }
  0x57   : > { %373 = vmatpush.msra.mxu1 %v341_v24 }
  0xbb   : > { %v294_v20 = vpop.f32.mrf.mxu0 }
  0xbc   : > { %v295_v21 = vadd.f32 %v618_v17, %v294_v20 }
  0xbe   : > { %v298_v23 = vmul.f32 0.70710677, %v295_v21  ;;  %v297_v60 = vmul.f32 0.5, %v295_v21 }
  0xc0   : > { %v299_v25 = vmul.f32 %v298_v23, %v298_v23 }
  0xc2   : > { %v300_v26 = vmin.f32 %v299_v25, 16.0 }
  0xc4   : > { %v301_v27 = vmul.f32 2.1237322e-06, %v300_v26  ;;  %v312_v28 = vmul.f32 3.8918573e-05, %v300_v26 }
  0xc6   : > { %v302_v29 = vadd.f32 0.00028619796, %v301_v27  ;;  %v313_v30 = vadd.f32 0.001143296, %v312_v28 }
  0xc8   : > { %v303_v31 = vmul.f32 %v302_v29, %v300_v26  ;;  %v314_v32 = vmul.f32 %v313_v30, %v300_v26 }
  0xca   : > { %v315_v33 = vadd.f32 0.014752088, %v314_v32  ;;  %v304_v34 = vadd.f32 0.0036580483, %v303_v31 }
  0xcc   : > { %v316_v35 = vmul.f32 %v315_v33, %v300_v26  ;;  %v305_v37 = vmul.f32 %v304_v34, %v300_v26 }
  0xce   : > { %v317_v36 = vadd.f32 0.112945676, %v316_v35  ;;  %v306_v40 = vadd.f32 0.05243302, %v305_v37 }
  0xd0   : > { %v318_v38 = vmul.f32 %v317_v36, %v300_v26  ;;  %v307_v43 = vmul.f32 %v306_v40, %v300_v26 }
  0xd2   : > { %v319_v39 = vadd.f32 0.4994258, %v318_v38  ;;  %v308_v44 = vadd.f32 0.18741608, %v307_v43 }
  0xd4   : > { %v320_v41 = vmul.f32 %v319_v39, %v300_v26  ;;  %v309_v46 = vmul.f32 %v308_v44, %v300_v26 }
  0xd6   : > { %v321_v42 = vadd.f32 1.0, %v320_v41  ;;  %v310_v50 = vadd.f32 1.1283791, %v309_v46 }
  0xd8   : > { %622 = vrcp.f32 %v321_v42  ;;  %v333_v49 = vand.u32 2147483648, %v321_v42  ;;  %v331_v52 = vand.u32 2147483647, %v321_v42  ;;  %vm327_vm2 = vweird.f32 %v321_v42 }
  0xd9   : > { %v311_v55 = vmul.f32 %v310_v50, %v298_v23 }
  0xda   : > { %v334_v54 = vor.u32 1.1754944e-38, %v333_v49  ;;  %vm332_vm4 = vcmp.eq.f32.partialorder %v331_v52, 8.507059e+37 }
  0xde   : > { %v623_v45 = vpop.eup %622 }
  0xdf   : > { %v323_v47 = vmul.f32 %v623_v45, %v321_v42  ;;  %vm328_vm1 = vweird.f32 %v623_v45 }
  0xe0   : > { %vm329_vm3 = vmor %vm327_vm2, %vm328_vm1 }
  0xe1   : > { %v324_v48 = vsub.f32 1.0, %v323_v47 }
  0xe3   : > { %v325_v51 = vmul.f32 %v623_v45, %v324_v48 }
  0xe5   : > { %v326_v53 = vadd.f32 %v623_v45, %v325_v51 }
  0xe7   : > { %v330_v56 = vsel %vm329_vm3, %v623_v45, %v326_v53 }
  0xe8   : > { %v335_v57 = vsel %vm332_vm4, %v334_v54, %v330_v56 }
  0xe9   : > { %v336_v58 = vmul.f32 %v335_v57, %v311_v55 }
  0xeb   : > { %v534_v59 = vclamps-f32 %v336_v58, 1.0 }
  0xed   : > { %v339_v61 = vadd.f32 1.0, %v534_v59 }
  0xef   : > { %v340_v62 = vmul.f32 %v339_v61, %v297_v60 }
  0xf1   : > { %374 = vmatmul.f32.vlgmr.msra.gmra.mxu1 %v340_v62 }
 0x16e   : > { %v375_v0 = vpop.f32.mrf.mxu1 }
 0x16f   : > { %v376_v1 = vadd.f32 %v619_v63, %v375_v0 }
 0x171   : > { %v378_v2 = vadd.f32 %v376_v1, %v295_v21 }
 0x173   : > { %379 = vadd.xlane.f32.xlu0 %v378_v2 }
 0x1e6   : > { %v380_v3 = vpop.xlane.xlu0 %379 }
 0x1e7   : > { %v381_v4 = vmul.f32 0.0078125, %v380_v3 }
 0x1e9   : > { %v382_v5 = vsub.f32 %v378_v2, %v381_v4 }
 0x1eb   : > { %v383_v6 = vmul.f32 %v382_v5, %v382_v5 }
 0x1ed   : > { %384 = vadd.xlane.f32.xlu0 %v383_v6 }
 0x260   : > { %v385_v7 = vpop.xlane.xlu0 %384 }
 0x261   : > { %v386_v8 = vmul.f32 0.0078125, %v385_v7 }
 0x263   : > { %v387_v9 = vadd.f32 1e-05, %v386_v8 }
 0x265   : > { %624 = vrsqrt.f32 %v387_v9  ;;  %vm394_vm6 = vweird.f32 %v387_v9 }
 0x26b   : > { %v625_v10 = vpop.eup %624 }
 0x26c   : > { %v389_v11 = vmul.f32 %v625_v10, %v387_v9  ;;  %vm395_vm5 = vweird.f32 %v625_v10 }
 0x26d   : > { %vm396_vm7 = vmor %vm394_vm6, %vm395_vm5 }
 0x26e   : > { %v390_v12 = vmul.f32 %v625_v10, %v389_v11 }
 0x270   : > { %v391_v13 = vmul.f32 0.5, %v390_v12 }
 0x272   : > { %v392_v14 = vsub.f32 1.5, %v391_v13 }
 0x274   : > { %v393_v15 = vmul.f32 %v625_v10, %v392_v14 }
 0x276   : > { %v397_v17 = vsel %vm396_vm7, %v625_v10, %v393_v15 }
 0x277   : > { %v398_v18 = vmul.f32 %v397_v17, %v382_v5 }
 0x279   : > { %v400_v20 = vmul.f32 %v620_v16, %v398_v18 }
 0x27b   : > { %v402_v21 = vadd.f32 %v621_v19, %v400_v20 }
 0x27d   : > { %403 = vst [vmem:[%s262_s10] sm:$0xff] %v402_v21 }
 0x27e   : > { %773 = shalt.err (!%p770_p9)
}
 0x27f   : > { %553 = dma.vmem_to_hbm [thread:$0]  (%p928_p13), %s418_s11, 128, %s420_s12, %s405_s22  }
 0x280 PF: > { %s431_s26 = sand.u32 1, %s808_s15   ;;  %p1023_p10 = scmp.ge.s32.totalorder %s820_s18, 2 }
 0x281   : > { %s432_s6 = scalar_lea.sflag [#allocation4], %s431_s26 }
 0x282   : > { %p570_p11 = pnand %p1023_p10, %p933_p4 }
 0x284   : > { %p571_p0 = pneg %p570_p11 }
 0x286   : > { %803 = dma.done.wait (%p571_p0), %s432_s6, 128  }
 0x287   : > { %805 = vsyncadd (%p571_p0), %s432_s6, 4294967168  ;;  %p19_p2 = scmp.ge.s32.totalorder %s908_s14, 4   ;;  %s1024_s15 = smov %s812_s16 }
 0x288   : > { %s1025_s16 = smov %s816_s17  ;;  %s1026_s17 = smov %s920_s21 }
 0x289   : > { %s1027_s18 = smov %s908_s14  ;;  %21 = sbr.rel (!%p19_p2) target bundleno = 7 (0x7), region = 93 }
 0x28e   :  { %438 = vsyncpa [#allocation3], 1 }
 0x28f   :  { %440 = vsyncpa [#allocation3 + $0x1], 1 }
 0x290   :  { %441 = vsyncpa [#allocation6], 1 }
 0x291   :  { %442 = vsyncpa [#allocation9], 1 }
 0x292   :  { %443 = vsyncpa [#allocation4], 1 }
 0x293   :  { %445 = vsyncpa [#allocation4 + $0x1], 1 }

</bundles_post_ra>
